<compile_context>
chip_gen: v5e
topology: v5e:2x2
jax: 0.10.0
libtpu: 0.0.40
codegen_flags: <defaults>
</compile_context>

<pallas_src>
import functools

import jax
import jax.numpy as jnp
from jax.experimental import pallas as pl
from jax.experimental.pallas import tpu as pltpu

LANE = 128  # packed aggregation feature width (TPU lane count)


def _round_up(x, m):
    return (x + m - 1) // m * m


def sse_kernel(c_ref, f_ref, nf_ref, h_ref, w1a_ref, w1n_ref, w2_ref, out_ref, acc_ref,
               *, tk, deg_col, node_dim, f_resident, row_chunk, epi_rows):
    k = pl.program_id(1)
    tm = acc_ref.shape[0]

    @pl.when(k == 0)
    def _init():
        acc_ref[...] = jnp.zeros_like(acc_ref)

    # ---- fused aggregation ------------------------------------------------------------
    #   acc[:, :H]      += A @ h       (h_sum)
    #   acc[:, H:H+ed]  += B @ ef      (e_sum)
    #   acc[:, deg_col] += in-degree   (ones column of F, exact counts in f32 accumulate)
    # C arrives as int8 and is upcast to bf16 on the VPU in row chunks so the cast
    # temporary stays small; F is either VMEM-resident (sliced per k step) or streamed.
    for r in range(tm // row_chunk):
        rows = slice(r * row_chunk, (r + 1) * row_chunk)
        cb = c_ref[rows, :].astype(jnp.bfloat16)            # (row_chunk, tk) bf16
        if f_resident:
            fb = f_ref[pl.ds(pl.multiple_of(k * tk, tk), tk), :]
        else:
            fb = f_ref[...]
        acc_ref[rows, :] += jnp.dot(cb, fb, preferred_element_type=jnp.float32)

    # ---- epilogue: z = [x, deg*x, e_sum, h_sum];  h' = relu(z W1^T) W2^T, gated on deg ----
    @pl.when(k == pl.num_programs(1) - 1)
    def _epilogue():
        def _one(c, carry):
            r0 = pl.multiple_of(c * epi_rows, epi_rows)
            rs = pl.ds(r0, epi_rows)
            agg = acc_ref[rs, :]                              # (epi_rows, 128) f32
            deg = agg[:, deg_col:deg_col + 1]                 # exact in-degree counts
            nfv = nf_ref[rs, :]                               # (epi_rows, nd) f32

            # h_sum / e_sum part of W1: one lane-dense (128 x H_pad) matmul.
            pre = jnp.dot(agg, w1a_ref[...], preferred_element_type=jnp.float32)
            # x / deg*x part of W1: nd is tiny, apply it as broadcasted f32 FMAs on the
            # VPU (avoids the masked store->reload of the accumulator used previously).
            for d in range(node_dim):
                col = nfv[:, d:d + 1]
                pre = pre + col * w1n_ref[d:d + 1, :]
                pre = pre + (deg * col) * w1n_ref[node_dim + d:node_dim + d + 1, :]

            hidden = jnp.maximum(pre, 0.0)                    # ReLU, lane-dense (., H_pad)
            new_h = jnp.dot(hidden, w2_ref[...], preferred_element_type=jnp.float32)
            # Nodes that received no message keep their previous (original f32) state.
            out_ref[rs, :] = jnp.where(deg > 0.0, new_h, h_ref[rs, :])
            return carry

        jax.lax.fori_loop(0, tm // epi_rows, _one, 0)


def sse_layer(adj, inc, h, nf, ef, W1, W2, *, tm_max=512, tk_max=2048):
    """adj: (N,N) dst<-src multiplicity, inc: (N,E) dst incidence, f32 inputs."""
    N, H = h.shape
    E, ed = ef.shape
    nd = nf.shape[1]
    assert adj.shape == (N, N) and inc.shape == (N, E)
    assert W1.shape == (H, H + 2 * nd + ed) and W2.shape == (H, H)
    assert H + ed < LANE, "hidden + edge dims (+ deg lane) must fit in 128 lanes"

    f32, bf16 = jnp.float32, jnp.bfloat16
    deg_col = H + ed
    H_pad = _round_up(H, LANE)      # lane-dense hidden activations / W2 output

    # ---- tile selection -----------------------------------------------------------------
    tm = 32
    while tm < tm_max and tm < N:
        tm *= 2
    n_pad = _round_up(N, tm)
    # v7x shards the "parallel" row axis over 2 TensorCores: keep >= 2 row tiles when the
    # graph is big enough for that to matter (no effect on v5e/v6e correctness or perf).
    if n_pad // tm < 2 and tm > 32:
        tm //= 2
        n_pad = _round_up(N, tm)

    e_off = _round_up(N, LANE)                  # edge block starts here in the contraction
    k_total = e_off + E
    tk = min(tk_max, _round_up(k_total, LANE))
    k_pad = _round_up(k_total, tk)

    row_chunk = min(tm, 64)       # bounds the int8->bf16 cast temporary in the hot loop
    epi_rows = min(tm, 128)       # bounds pre/hidden/new_h vreg pressure in the epilogue

    # ---- operand packing (built directly in final dtypes; no f32 dense intermediates) ----
    # C = [ A | B ] as int8: multiplicities / 0-1 incidence are tiny integers.
    # NOTE: int8 represents per-entry edge multiplicities exactly only up to 127.
    C = jnp.zeros((n_pad, k_pad), jnp.int8)
    C = C.at[:N, :N].set(adj.astype(jnp.int8))
    C = C.at[:N, e_off:e_off + E].set(inc.astype(jnp.int8))

    # F: block-diagonal source features plus a ones column whose matmul yields in-degree.
    F = jnp.zeros((k_pad, LANE), bf16)
    F = F.at[:N, :H].set(h.astype(bf16))
    F = F.at[:N, deg_col].set(1.0)
    F = F.at[e_off:e_off + E, H:H + ed].set(ef.astype(bf16))

    nf_p = jnp.zeros((n_pad, nd), f32).at[:N].set(nf)
    h_p = jnp.zeros((n_pad, LANE), f32).at[:N, :H].set(h)    # f32 fallback for deg==0 nodes

    # W1 split into (a) packed rows matching the aggregation lane layout (one lane-dense
    # 128 x H_pad matmul) and (b) the tiny x / deg*x blocks applied on the VPU.
    # Original W1 column order: [x (nd) | deg*x (nd) | e_sum (ed) | h_sum (H)].
    w1a = jnp.zeros((LANE, H_pad), f32)
    w1a = w1a.at[:H, :H].set(W1[:, 2 * nd + ed:].T)                 # h_sum rows
    w1a = w1a.at[H:H + ed, :H].set(W1[:, 2 * nd:2 * nd + ed].T)     # e_sum rows
    # (deg_col row stays zero: deg only gates the output, it is not a feature.)
    w1n = jnp.zeros((2 * nd, H_pad), f32)
    w1n = w1n.at[:nd, :H].set(W1[:, :nd].T)                         # x rows
    w1n = w1n.at[nd:, :H].set(W1[:, nd:2 * nd].T)                   # deg*x rows
    w2p = jnp.zeros((H_pad, LANE), f32).at[:H, :H].set(W2.T)        # lane-dense output

    # F residency: fetched once (constant index_map) when it fits a conservative budget
    # that stays inside v7x's 64 MiB physical VMEM; otherwise streamed per k tile.
    f_resident = 2 * k_pad * LANE * 2 <= 16 * 1024 * 1024
    if f_resident:
        f_spec = pl.BlockSpec((k_pad, LANE), lambda i, k: (0, 0))
    else:
        f_spec = pl.BlockSpec((tk, LANE), lambda i, k: (k, 0))

    grid = (n_pad // tm, k_pad // tk)

    kernel = functools.partial(
        sse_kernel, tk=tk, deg_col=deg_col, node_dim=nd,
        f_resident=f_resident, row_chunk=row_chunk, epi_rows=epi_rows)

    # VMEM budget (double-buffered blocks, lane-padded small dims); cap below v7x's 64 MiB.
    f_buf_rows = k_pad if f_resident else tk
    vmem_est = (2 * tm * tk                                   # C tiles (int8)
                + 2 * f_buf_rows * LANE * 2                   # F (resident or per-k tile)
                + 2 * 3 * tm * LANE * 4                       # nf / old-h / out tiles
                + tm * LANE * 4                               # accumulator scratch
                + 2 * (LANE + 2 * nd + H_pad) * H_pad * 4)    # resident weights
    vmem_limit = int(min(48 * 1024 * 1024, max(vmem_est + (8 << 20), 32 * 1024 * 1024)))

    n_row_tiles = n_pad // tm
    flops = 2 * n_pad * k_pad * LANE + 4 * n_pad * H_pad * LANE
    bytes_accessed = (C.size                                   # int8 stream (dominant)
                      + F.size * 2 * (1 if f_resident else n_row_tiles)
                      + (nf_p.size + h_p.size + w1a.size + w1n.size + w2p.size) * 4
                      + n_pad * LANE * 4)

    out_pad = pl.pallas_call(
        kernel,
        out_shape=jax.ShapeDtypeStruct((n_pad, LANE), f32),
        grid_spec=pltpu.PrefetchScalarGridSpec(
            num_scalar_prefetch=0,
            grid=grid,
            in_specs=[
                pl.BlockSpec((tm, tk), lambda i, k: (i, k)),        # C tile (int8 stream)
                f_spec,                                             # F (resident / per-k)
                pl.BlockSpec((tm, nd), lambda i, k: (i, 0)),        # dst node features
                pl.BlockSpec((tm, LANE), lambda i, k: (i, 0)),      # old h (deg==0 fallback)
                pl.BlockSpec((LANE, H_pad), lambda i, k: (0, 0)),   # packed W1 (agg part)
                pl.BlockSpec((2 * nd, H_pad), lambda i, k: (0, 0)), # W1 x / deg*x part
                pl.BlockSpec((H_pad, LANE), lambda i, k: (0, 0)),   # padded W2 (resident)
            ],
            out_specs=pl.BlockSpec((tm, LANE), lambda i, k: (i, 0)),
            scratch_shapes=[pltpu.VMEM((tm, LANE), jnp.float32)],
        ),
        compiler_params=pltpu.CompilerParams(
            # row axis parallel (2 TCs on v7x), contraction axis arbitrary (accumulator).
            dimension_semantics=("parallel", "arbitrary"),
            vmem_limit_bytes=vmem_limit,
        ),
        cost_estimate=pl.CostEstimate(
            flops=int(flops), transcendentals=0, bytes_accessed=int(bytes_accessed)),
    )(C, F, nf_p, h_p, w1a, w1n, w2p)

    return out_pad[:N, :H]


def sse_reference(adj, inc, h, nf, ef, W1, W2, agg_dtype=jnp.float32):
    """Pure-JAX reference. agg_dtype mimics the kernel's narrowed aggregation inputs."""
    hq = h.astype(agg_dtype).astype(jnp.float32)
    eq = ef.astype(agg_dtype).astype(jnp.float32)
    h_sum = adj @ hq
    ef_sum = inc @ eq
    deg = jnp.sum(adj, axis=-1, keepdims=True)
    z = jnp.concatenate([nf, deg * nf, ef_sum, h_sum], axis=-1)
    new_h = jnp.maximum(z @ W1.T, 0.0) @ W2.T
    return jnp.where(deg > 0, new_h, h)          # untouched nodes keep the original f32 h


if __name__ == "__main__":
    key = jax.random.PRNGKey(0)
    N, E = 8, 16
    node_dim, edge_dim, hidden_dim = 4, 4, 32

    k1, k2, k3, k4, k5, k6 = jax.random.split(key, 6)
    h = jax.random.normal(k1, (N, hidden_dim), jnp.float32)
    nf = jax.random.normal(k2, (N, node_dim), jnp.float32)
    ef = jax.random.normal(k3, (E, edge_dim), jnp.float32)

    # Deterministic edge list: a ring (every node has in-degree >= 1) plus random
    # extra edges (may create multi-edges -> multiplicity in adj).
    ring_src = jnp.arange(N)
    ring_dst = (jnp.arange(N) + 1) % N
    extra_src = jax.random.randint(k4, (E - N,), 0, N)
    extra_dst = jax.random.randint(k5, (E - N,), 0, N)
    src = jnp.concatenate([ring_src, extra_src])
    dst = jnp.concatenate([ring_dst, extra_dst])

    adj = jnp.zeros((N, N), jnp.float32).at[dst, src].add(1.0)
    inc = jnp.zeros((N, E), jnp.float32).at[dst, jnp.arange(E)].set(1.0)

    # nn.Linear weight shapes (bias=False): W1 (hidden, hidden + 2*node + edge), W2 (hidden, hidden)
    d_in = hidden_dim + 2 * node_dim + edge_dim
    kw1, kw2 = jax.random.split(k6)
    W1 = jax.random.normal(kw1, (hidden_dim, d_in), jnp.float32) / jnp.sqrt(d_in)
    W2 = jax.random.normal(kw2, (hidden_dim, hidden_dim), jnp.float32) / jnp.sqrt(hidden_dim)

    out = sse_layer(adj, inc, h, nf, ef, W1, W2)
    out = jax.block_until_ready(out)
    assert out.shape == (N, hidden_dim)

    # Tight check against a reference run at the kernel's aggregation precision (bf16 h/ef,
    # exact int8 adjacency/incidence), plus a loose sanity check against pure f32.
    ref_bf16 = sse_reference(adj, inc, h, nf, ef, W1, W2, agg_dtype=jnp.bfloat16)
    assert jnp.allclose(out, ref_bf16, rtol=2e-3, atol=2e-3), \
        float(jnp.max(jnp.abs(out - ref_bf16)))
    ref_f32 = sse_reference(adj, inc, h, nf, ef, W1, W2)
    assert jnp.allclose(out, ref_f32, rtol=5e-2, atol=5e-2), \
        float(jnp.max(jnp.abs(out - ref_f32)))

    print("KERNEL_OK")
</pallas_src>

<mosaic_0001>
module attributes {stable_mosaic.version = 11 : i64} {
  func.func @sse_kernel(%arg0: i32, %arg1: i32, %arg2: memref<32x256xi8, #tpu.memory_space<vmem>>, %arg3: memref<256x128xbf16, #tpu.memory_space<vmem>>, %arg4: memref<32x4xf32, #tpu.memory_space<vmem>>, %arg5: memref<32x128xf32, #tpu.memory_space<vmem>>, %arg6: memref<128x128xf32, #tpu.memory_space<vmem>>, %arg7: memref<8x128xf32, #tpu.memory_space<vmem>>, %arg8: memref<128x128xf32, #tpu.memory_space<vmem>>, %arg9: memref<32x128xf32, #tpu.memory_space<vmem>>, %arg10: memref<32x128xf32, #tpu.memory_space<vmem>>) attributes {dimension_semantics = [#tpu.dimension_semantics<parallel>, #tpu.dimension_semantics<arbitrary>], iteration_bounds = array<i64: 1, 1>, scalar_prefetch = 0 : i64, scratch_operands = 1 : i64, tpu.core_type = #tpu.core_type<tc>, window_params = [{transform_indices = @transform_0, window_bounds = array<i64: 32, 256>}, {pipeline_mode = #tpu.pipeline_mode<synchronous>, transform_indices = @transform_1, window_bounds = array<i64: 256, 128>}, {transform_indices = @transform_2, window_bounds = array<i64: 32, 4>}, {transform_indices = @transform_3, window_bounds = array<i64: 32, 128>}, {pipeline_mode = #tpu.pipeline_mode<synchronous>, transform_indices = @transform_4, window_bounds = array<i64: 128, 128>}, {pipeline_mode = #tpu.pipeline_mode<synchronous>, transform_indices = @transform_5, window_bounds = array<i64: 8, 128>}, {pipeline_mode = #tpu.pipeline_mode<synchronous>, transform_indices = @transform_6, window_bounds = array<i64: 128, 128>}, {transform_indices = @transform_7, window_bounds = array<i64: 32, 128>}]} {
    %c0_i32 = arith.constant 0 : i32
    %0 = arith.cmpi eq, %arg1, %c0_i32 : i32
    %1 = arith.extui %0 : i1 to i32
    %c0_i32_0 = arith.constant 0 : i32
    %2 = arith.cmpi ne, %1, %c0_i32_0 : i32
    scf.if %2 {
      %cst_9 = arith.constant 0.000000e+00 : f32
      %16 = vector.broadcast %cst_9 : f32 to vector<32x128xf32>
      %c0_10 = arith.constant 0 : index
      %c0_11 = arith.constant 0 : index
      %17 = vector.load %arg10[%c0_10, %c0_11] : memref<32x128xf32, #tpu.memory_space<vmem>>, vector<32x128xf32>
      tpu.vector_store %arg10[%c0_10, %c0_11], %16 {strides = array<i32>} : memref<32x128xf32, #tpu.memory_space<vmem>>, vector<32x128xf32>,
    } else {
    }
    %c0 = arith.constant 0 : index
    %c0_1 = arith.constant 0 : index
    %3 = vector.load %arg2[%c0, %c0_1] : memref<32x256xi8, #tpu.memory_space<vmem>>, vector<32x256xi8>
    %4 = arith.sitofp %3 : vector<32x256xi8> to vector<32x256xbf16>
    %c256_i32 = arith.constant 256 : i32
    %5 = arith.muli %arg1, %c256_i32 : i32
    %6 = tpu.assume_multiple %5, 256 : i32
    %7 = arith.index_cast %6 : i32 to index
    %c0_2 = arith.constant 0 : index
    %8 = vector.load %arg3[%7, %c0_2] : memref<256x128xbf16, #tpu.memory_space<vmem>>, vector<256x128xbf16>
    %c0_3 = arith.constant 0 : index
    %c0_4 = arith.constant 0 : index
    %9 = vector.load %arg10[%c0_3, %c0_4] : memref<32x128xf32, #tpu.memory_space<vmem>>, vector<32x128xf32>
    %cst = arith.constant dense<0.000000e+00> : vector<32x128xf32>
    %10 = tpu.matmul %4, %8, %cst {dimension_numbers = #tpu.dot_dimension_numbers<[1], [0], [0], [1], [0, 0, 1, 1], [], []>} : vector<32x256xbf16>, vector<256x128xbf16>, vector<32x128xf32> -> vector<32x128xf32>
    %11 = arith.addf %9, %10 : vector<32x128xf32>
    %c0_5 = arith.constant 0 : index
    %c0_6 = arith.constant 0 : index
    %12 = vector.load %arg10[%c0_5, %c0_6] : memref<32x128xf32, #tpu.memory_space<vmem>>, vector<32x128xf32>
    tpu.vector_store %arg10[%c0_5, %c0_6], %11 {strides = array<i32>} : memref<32x128xf32, #tpu.memory_space<vmem>>, vector<32x128xf32>,
    %c0_i32_7 = arith.constant 0 : i32
    %13 = arith.cmpi eq, %arg1, %c0_i32_7 : i32
    %14 = arith.extui %13 : i1 to i32
    %c0_i32_8 = arith.constant 0 : i32
    %15 = arith.cmpi ne, %14, %c0_i32_8 : i32
    scf.if %15 {
      %c0_i32_9 = arith.constant 0 : i32
      %c32_i32 = arith.constant 32 : i32
      %16 = arith.muli %c0_i32_9, %c32_i32 : i32
      %17 = tpu.assume_multiple %16, 32 : i32
      %18 = arith.index_cast %17 : i32 to index
      %c0_10 = arith.constant 0 : index
      %19 = vector.load %arg10[%18, %c0_10] : memref<32x128xf32, #tpu.memory_space<vmem>>, vector<32x128xf32>
      %20 = vector.extract_strided_slice %19 {offsets = [0, 36], sizes = [32, 1], strides = [1, 1]} : vector<32x128xf32> to vector<32x1xf32>
      %21 = arith.index_cast %17 : i32 to index
      %c0_11 = arith.constant 0 : index
      %22 = vector.load %arg4[%21, %c0_11] : memref<32x4xf32, #tpu.memory_space<vmem>>, vector<32x4xf32>
      %c0_12 = arith.constant 0 : index
      %c0_13 = arith.constant 0 : index
      %23 = vector.load %arg6[%c0_12, %c0_13] : memref<128x128xf32, #tpu.memory_space<vmem>>, vector<128x128xf32>
      %cst_14 = arith.constant dense<0.000000e+00> : vector<32x128xf32>
      %24 = tpu.matmul %19, %23, %cst_14 {dimension_numbers = #tpu.dot_dimension_numbers<[1], [0], [0], [1], [0, 0, 1, 1], [], []>} : vector<32x128xf32>, vector<128x128xf32>, vector<32x128xf32> -> vector<32x128xf32>
      %25 = vector.extract_strided_slice %22 {offsets = [0, 0], sizes = [32, 1], strides = [1, 1]} : vector<32x4xf32> to vector<32x1xf32>
      %c0_15 = arith.constant 0 : index
      %c0_16 = arith.constant 0 : index
      %26 = vector.load %arg7[%c0_15, %c0_16] : memref<8x128xf32, #tpu.memory_space<vmem>>, vector<1x128xf32>
      %27 = vector.broadcast %25 : vector<32x1xf32> to vector<32x128xf32>
      %28 = vector.broadcast %26 : vector<1x128xf32> to vector<32x128xf32>
      %29 = arith.mulf %27, %28 : vector<32x128xf32>
      %30 = arith.addf %24, %29 : vector<32x128xf32>
      %31 = arith.mulf %20, %25 : vector<32x1xf32>
      %c4 = arith.constant 4 : index
      %c0_17 = arith.constant 0 : index
      %32 = vector.load %arg7[%c4, %c0_17] : memref<8x128xf32, #tpu.memory_space<vmem>>, vector<1x128xf32>
      %33 = vector.broadcast %31 : vector<32x1xf32> to vector<32x128xf32>
      %34 = vector.broadcast %32 : vector<1x128xf32> to vector<32x128xf32>
      %35 = arith.mulf %33, %34 : vector<32x128xf32>
      %36 = arith.addf %30, %35 : vector<32x128xf32>
      %37 = vector.extract_strided_slice %22 {offsets = [0, 1], sizes = [32, 1], strides = [1, 1]} : vector<32x4xf32> to vector<32x1xf32>
      %c1 = arith.constant 1 : index
      %c0_18 = arith.constant 0 : index
      %38 = vector.load %arg7[%c1, %c0_18] : memref<8x128xf32, #tpu.memory_space<vmem>>, vector<1x128xf32>
      %39 = vector.broadcast %37 : vector<32x1xf32> to vector<32x128xf32>
      %40 = vector.broadcast %38 : vector<1x128xf32> to vector<32x128xf32>
      %41 = arith.mulf %39, %40 : vector<32x128xf32>
      %42 = arith.addf %36, %41 : vector<32x128xf32>
      %43 = arith.mulf %20, %37 : vector<32x1xf32>
      %c5 = arith.constant 5 : index
      %c0_19 = arith.constant 0 : index
      %44 = vector.load %arg7[%c5, %c0_19] : memref<8x128xf32, #tpu.memory_space<vmem>>, vector<1x128xf32>
      %45 = vector.broadcast %43 : vector<32x1xf32> to vector<32x128xf32>
      %46 = vector.broadcast %44 : vector<1x128xf32> to vector<32x128xf32>
      %47 = arith.mulf %45, %46 : vector<32x128xf32>
      %48 = arith.addf %42, %47 : vector<32x128xf32>
      %49 = vector.extract_strided_slice %22 {offsets = [0, 2], sizes = [32, 1], strides = [1, 1]} : vector<32x4xf32> to vector<32x1xf32>
      %c2 = arith.constant 2 : index
      %c0_20 = arith.constant 0 : index
      %50 = vector.load %arg7[%c2, %c0_20] : memref<8x128xf32, #tpu.memory_space<vmem>>, vector<1x128xf32>
      %51 = vector.broadcast %49 : vector<32x1xf32> to vector<32x128xf32>
      %52 = vector.broadcast %50 : vector<1x128xf32> to vector<32x128xf32>
      %53 = arith.mulf %51, %52 : vector<32x128xf32>
      %54 = arith.addf %48, %53 : vector<32x128xf32>
      %55 = arith.mulf %20, %49 : vector<32x1xf32>
      %c6 = arith.constant 6 : index
      %c0_21 = arith.constant 0 : index
      %56 = vector.load %arg7[%c6, %c0_21] : memref<8x128xf32, #tpu.memory_space<vmem>>, vector<1x128xf32>
      %57 = vector.broadcast %55 : vector<32x1xf32> to vector<32x128xf32>
      %58 = vector.broadcast %56 : vector<1x128xf32> to vector<32x128xf32>
      %59 = arith.mulf %57, %58 : vector<32x128xf32>
      %60 = arith.addf %54, %59 : vector<32x128xf32>
      %61 = vector.extract_strided_slice %22 {offsets = [0, 3], sizes = [32, 1], strides = [1, 1]} : vector<32x4xf32> to vector<32x1xf32>
      %c3 = arith.constant 3 : index
      %c0_22 = arith.constant 0 : index
      %62 = vector.load %arg7[%c3, %c0_22] : memref<8x128xf32, #tpu.memory_space<vmem>>, vector<1x128xf32>
      %63 = vector.broadcast %61 : vector<32x1xf32> to vector<32x128xf32>
      %64 = vector.broadcast %62 : vector<1x128xf32> to vector<32x128xf32>
      %65 = arith.mulf %63, %64 : vector<32x128xf32>
      %66 = arith.addf %60, %65 : vector<32x128xf32>
      %67 = arith.mulf %20, %61 : vector<32x1xf32>
      %c7 = arith.constant 7 : index
      %c0_23 = arith.constant 0 : index
      %68 = vector.load %arg7[%c7, %c0_23] : memref<8x128xf32, #tpu.memory_space<vmem>>, vector<1x128xf32>
      %69 = vector.broadcast %67 : vector<32x1xf32> to vector<32x128xf32>
      %70 = vector.broadcast %68 : vector<1x128xf32> to vector<32x128xf32>
      %71 = arith.mulf %69, %70 : vector<32x128xf32>
      %72 = arith.addf %66, %71 : vector<32x128xf32>
      %cst_24 = arith.constant 0.000000e+00 : f32
      %73 = vector.broadcast %cst_24 : f32 to vector<32x128xf32>
      %74 = arith.maximumf %72, %73 : vector<32x128xf32>
      %c0_25 = arith.constant 0 : index
      %c0_26 = arith.constant 0 : index
      %75 = vector.load %arg8[%c0_25, %c0_26] : memref<128x128xf32, #tpu.memory_space<vmem>>, vector<128x128xf32>
      %cst_27 = arith.constant dense<0.000000e+00> : vector<32x128xf32>
      %76 = tpu.matmul %74, %75, %cst_27 {dimension_numbers = #tpu.dot_dimension_numbers<[1], [0], [0], [1], [0, 0, 1, 1], [], []>} : vector<32x128xf32>, vector<128x128xf32>, vector<32x128xf32> -> vector<32x128xf32>
      %cst_28 = arith.constant 0.000000e+00 : f32
      %77 = vector.broadcast %cst_28 : f32 to vector<32x1xf32>
      %78 = arith.cmpf ogt, %20, %77 : vector<32x1xf32>
      %79 = arith.index_cast %17 : i32 to index
      %c0_29 = arith.constant 0 : index
      %80 = vector.load %arg5[%79, %c0_29] : memref<32x128xf32, #tpu.memory_space<vmem>>, vector<32x128xf32>
      %81 = vector.shape_cast %78 : vector<32x1xi1> to vector<32x1xi1>
      %82 = vector.broadcast %81 : vector<32x1xi1> to vector<32x128xi1>
      %83 = arith.select %82, %76, %80 : vector<32x128xi1>, vector<32x128xf32>
      %84 = arith.index_cast %17 : i32 to index
      %c0_30 = arith.constant 0 : index
      %85 = vector.load %arg9[%84, %c0_30] : memref<32x128xf32, #tpu.memory_space<vmem>>, vector<32x128xf32>
      tpu.vector_store %arg9[%84, %c0_30], %83 {strides = array<i32>} : memref<32x128xf32, #tpu.memory_space<vmem>>, vector<32x128xf32>,
      %c1_i32 = arith.constant 1 : i32
    } else {
    }
    return
  }
  func.func @transform_0(%arg0: i32, %arg1: i32) -> (i32, i32) {
    %c0_i32 = arith.constant 0 : i32
    return %arg0, %arg1 : i32, i32
  }
  func.func @transform_1(%arg0: i32, %arg1: i32) -> (i32, i32) {
    %c0_i32 = arith.constant 0 : i32
    %c0_i32_0 = arith.constant 0 : i32
    %c0_i32_1 = arith.constant 0 : i32
    return %c0_i32, %c0_i32_0 : i32, i32
  }
  func.func @transform_2(%arg0: i32, %arg1: i32) -> (i32, i32) {
    %c0_i32 = arith.constant 0 : i32
    %c0_i32_0 = arith.constant 0 : i32
    return %arg0, %c0_i32 : i32, i32
  }
  func.func @transform_3(%arg0: i32, %arg1: i32) -> (i32, i32) {
    %c0_i32 = arith.constant 0 : i32
    %c0_i32_0 = arith.constant 0 : i32
    return %arg0, %c0_i32 : i32, i32
  }
  func.func @transform_4(%arg0: i32, %arg1: i32) -> (i32, i32) {
    %c0_i32 = arith.constant 0 : i32
    %c0_i32_0 = arith.constant 0 : i32
    %c0_i32_1 = arith.constant 0 : i32
    return %c0_i32, %c0_i32_0 : i32, i32
  }
  func.func @transform_5(%arg0: i32, %arg1: i32) -> (i32, i32) {
    %c0_i32 = arith.constant 0 : i32
    %c0_i32_0 = arith.constant 0 : i32
    %c0_i32_1 = arith.constant 0 : i32
    return %c0_i32, %c0_i32_0 : i32, i32
  }
  func.func @transform_6(%arg0: i32, %arg1: i32) -> (i32, i32) {
    %c0_i32 = arith.constant 0 : i32
    %c0_i32_0 = arith.constant 0 : i32
    %c0_i32_1 = arith.constant 0 : i32
    return %c0_i32, %c0_i32_0 : i32, i32
  }
  func.func @transform_7(%arg0: i32, %arg1: i32) -> (i32, i32) {
    %c0_i32 = arith.constant 0 : i32
    %c0_i32_0 = arith.constant 0 : i32
    return %arg0, %c0_i32 : i32, i32
  }
}

</mosaic_0001>

<bundles_post_ra>
// kernel: tpu_custom_call.1
= control target key start
LH: loop header
LB: loop body
LE: loop exit
PB: predicated region body
PF: predicated region fallthrough
CT: control target
= control target key end

     0   :  { %12 = vsyncpa [#allocation4], 0  ;;  %s1290_s0 = inlined_call_operand.hbm [shape: s8[32,256], index: 0, kind: input, shape index: {}]   ;;  %s1291_s1 = inlined_call_operand.hbm [shape: bf16[256,128], index: 1, kind: input, shape index: {}]   ;;  %s1292_s2 = inlined_call_operand.vmem [shape: f32[32,4], index: 2, kind: input, shape index: {}]   ;;  %s1293_s3 = inlined_call_operand.vmem [shape: f32[32,128], index: 3, kind: input, shape index: {}]   ;;  %s1294_s4 = inlined_call_operand.hbm [shape: f32[128,128], index: 4, kind: input, shape index: {}]   ;;  %s1295_s5 = inlined_call_operand.vmem [shape: f32[8,128], index: 5, kind: input, shape index: {}]   ;;  %s1296_s6 = inlined_call_operand.hbm [shape: f32[128,128], index: 6, kind: input, shape index: {}]   ;;  %s1297_s7 = inlined_call_operand.hbm [shape: f32[32,128], index: 7, kind: output, shape index: {}]  }
   0x1   :  { %13 = vsyncpa [#allocation7], 0 }
   0x2   :  { %14 = vsyncpa [#allocation10], 0  ;;  %s31_s26 = sshll.u32 %s1291_s1, 4  ;;  %s32_s26 = int_to_ptr.hbm [resolvable:$true] %s31_s26 }
   0x3   :  { %15 = vsyncpa [#allocation5], 0  ;;  %s1008_s27 = smov [#allocation6]   ;;  %s21_s8 = sshll.u32 %s1290_s0, 4  ;;  %s22_s8 = int_to_ptr.hbm [resolvable:$true] %s21_s8 }
   0x4   :  { %s33_s28 = sshll.u32 %s1008_s27, 4  ;;  %s1009_s9 = smov 64   ;;  %s34_s28 = int_to_ptr.vmem [resolvable:$true] %s33_s28 }
   0x5   :  { %s1010_s10 = smov 4   ;;  %s1011_s11 = smov [#allocation3]  }
   0x6   :  { %39 = dma.hbm_to_vmem [thread:$0]  %s32_s26, 2048, %s34_s28, [#allocation7], %s1009_s9, %s1009_s9, %s1010_s10  }
   0x7   :  { %s23_s12 = sshll.u32 %s1011_s11, 4  ;;  %s48_s15 = sshll.u32 %s1294_s4, 4  ;;  %s24_s12 = int_to_ptr.vmem [resolvable:$true] %s23_s12  ;;  %s49_s15 = int_to_ptr.hbm [resolvable:$true] %s48_s15 }
   0x8   :  { %26 = dma.hbm_to_vmem [thread:$0]  %s22_s8, 256, %s24_s12, [#allocation4]  }
   0x9   :  { %s1012_s1 = smov [#allocation8]   ;;  %s63_s0 = sshll.u32 %s1296_s6, 4  ;;  %s64_s0 = int_to_ptr.hbm [resolvable:$true] %s63_s0 }
   0xa   :  { %s50_s16 = sshll.u32 %s1012_s1, 4  ;;  %s1013_s19 = smov 128   ;;  %s51_s16 = int_to_ptr.vmem [resolvable:$true] %s50_s16 }
   0xb   :  { %s1014_s20 = smov 8   ;;  %s1015_s21 = smov [#allocation9]  }
   0xc   :  { %56 = dma.hbm_to_vmem [thread:$0]  %s49_s15, 2048, %s51_s16, [#allocation7], %s1013_s19, %s1013_s19, %s1014_s20  }
   0xd   :  { %s65_s22 = sshll.u32 %s1015_s21, 4  ;;  %s66_s22 = int_to_ptr.vmem [resolvable:$true] %s65_s22 }
   0xe   :  { %71 = dma.hbm_to_vmem [thread:$0]  %s64_s0, 2048, %s66_s22, [#allocation10], %s1013_s19, %s1013_s19, %s1014_s20  }
   0xf   :  { %1000 = dma.done.wait [#allocation4], 256  }
  0x10   :  { %1001 = vsyncadd [#allocation4], 4294967040 }
  0x11   :  { %1002 = dma.done.wait [#allocation7], 4096  }
  0x12   :  { %1003 = vsyncadd [#allocation7], 4294963200 }
  0x13   :  { %1004 = dma.done.wait [#allocation10], 2048  }
  0x14   :  { %1005 = vsyncadd [#allocation10], 4294965248  ;;  %v1016_v0 = vmov 0   ;;  %v824_v1 = vld [vmem:[#allocation6 + $0x38] sm:$0xff]  ;;  %v823_v3 = vld [vmem:[#allocation6 + $0x30] sm:$0xff]  ;;  %s1017_s23 = smov 36  }
  0x15   :  { %851 = vset.pattern.permute.xlu0 %v1016_v0  ;;  %v832_v2 = vld [vmem:[#allocation6 + $0x78] sm:$0xff]  ;;  %255 = vmatpush.bf16.msra.mxu0 %v824_v1  ;;  %v831_v4 = vld [vmem:[#allocation6 + $0x70] sm:$0xff]  ;;  %v822_v6 = vld [vmem:[#allocation6 + $0x28] sm:$0xff]  ;;  %s1018_s26 = smov 35   ;;  %s1019_s27 = smov 34   ;;  %v1020_v17 = vmov 1  }
  0x16   :  { %274 = vmatpush.bf16.msra.mxu1 %v832_v2  ;;  %v1088_v5 = vld [vmem:[%s1292_s2] sm:$0xff]  ;;  %v830_v7 = vld [vmem:[#allocation6 + $0x68] sm:$0xff]  ;;  %v1096_v8 = vld [vmem:[%s1292_s2 + $0x8] sm:$0xff]  ;;  %852 = vset.pattern.permute.xlu1 %v1020_v17  ;;  %s1021_s28 = smov 33   ;;  %v1022_v25 = vmov 2   ;;  %v1023_v26 = vmov 3  }
  0x17   :  { %331 = vperm.xlu0 %851, %v1088_v5   ;;  %383 = vrot.lane.b32.xlu1 %v1088_v5, %s1017_s23  ;;  %v821_v9 = vld [vmem:[#allocation6 + $0x20] sm:$0xff]  ;;  %v820_v11 = vld [vmem:[#allocation6 + $0x18] sm:$0xff]  ;;  %v96_v13 = vld [vmem:[#allocation3] sm:$0xff]  ;;  %v1024_v62 = vmov 36   ;;  %s736_s9 = sshll.u32 %s1297_s7, 4  ;;  %s737_s9 = int_to_ptr.hbm [resolvable:$true] %s736_s9 }
  0x18   :  { %385 = vrot.lane.b32.xlu2 %v1096_v8, %s1017_s23  ;;  %v829_v10 = vld [vmem:[#allocation6 + $0x60] sm:$0xff]  ;;  %v828_v12 = vld [vmem:[#allocation6 + $0x58] sm:$0xff]  ;;  %v819_v14 = vld [vmem:[#allocation6 + $0x10] sm:$0xff]  ;;  %v98_v18 = vunpack.c.0.s8 %v96_v13  ;;  %v100_v19 = vunpack.c.1.s8 %v96_v13  ;;  %v102_v39 = vunpack.c.2.s8 %v96_v13  ;;  %v104_v40 = vunpack.c.3.s8 %v96_v13 }
  0x19   :  { %256 = vmatpush.bf16.msra.mxu0 %v823_v3  ;;  %v827_v15 = vld [vmem:[#allocation6 + $0x50] sm:$0xff]  ;;  %v97_v16 = vld [vmem:[#allocation3 + $0x8] sm:$0xff]  ;;  %v818_v22 = vld [vmem:[#allocation6 + $0x8] sm:$0xff]  ;;  %855 = vset.pattern.permute.xlu2 %v1023_v26 }
  0x1a   :  { %275 = vmatpush.bf16.msra.mxu1 %v831_v4  ;;  %v99_v20 = vunpack.c.0.s8 %v97_v16  ;;  %v101_v21 = vunpack.c.1.s8 %v97_v16  ;;  %v826_v23 = vld [vmem:[#allocation6 + $0x48] sm:$0xff]  ;;  %v1113_v24 = vld [vmem:[%s1292_s2 + $0x10] sm:$0xff]  ;;  %v106_v27 = vcvt.s32.f32 %v98_v18  ;;  %v108_v28 = vcvt.s32.f32 %v100_v19  ;;  %v327_v35 = vld [vmem:[#allocation8 + $0x78] sm:$0xff] }
  0x1b   :  { %v817_v31 = vld [vmem:[#allocation6] sm:$0xff]  ;;  %354 = vmatpush.msra.mxu2 %v327_v35  ;;  %v326_v36 = vld [vmem:[#allocation8 + $0x70] sm:$0xff]  ;;  %v325_v37 = vld [vmem:[#allocation8 + $0x68] sm:$0xff]  ;;  %v103_v41 = vunpack.c.2.s8 %v97_v16  ;;  %v105_v42 = vunpack.c.3.s8 %v97_v16  ;;  %v110_v44 = vcvt.s32.f32 %v102_v39  ;;  %v112_v45 = vcvt.s32.f32 %v104_v40 }
  0x1c   :  { %v107_v29 = vcvt.s32.f32 %v99_v20  ;;  %v109_v30 = vcvt.s32.f32 %v101_v21  ;;  %v825_v32 = vld [vmem:[#allocation6 + $0x40] sm:$0xff]  ;;  %v114_v33 = vpack.c.bf16 %v108_v28, %v106_v27  ;;  %v1128_v38 = vld [vmem:[%s1292_s2 + $0x18] sm:$0xff]  ;;  %v323_v50 = vld [vmem:[#allocation8 + $0x58] sm:$0xff] }
  0x1d   :  { %257 = vmatpush.bf16.msra.mxu0 %v822_v6  ;;  %355 = vmatpush.msra.mxu2 %v326_v36  ;;  %v324_v43 = vld [vmem:[#allocation8 + $0x60] sm:$0xff]  ;;  %v111_v46 = vcvt.s32.f32 %v103_v41  ;;  %v113_v47 = vcvt.s32.f32 %v105_v42  ;;  %v116_v48 = vpack.c.bf16 %v112_v45, %v110_v44  ;;  %v322_v51 = vld [vmem:[#allocation8 + $0x50] sm:$0xff]  ;;  %v321_v52 = vld [vmem:[#allocation8 + $0x48] sm:$0xff] }
  0x1e   :  { %276 = vmatpush.bf16.msra.mxu1 %v830_v7  ;;  %v115_v34 = vpack.c.bf16 %v109_v30, %v107_v29  ;;  %v320_v53 = vld [vmem:[#allocation8 + $0x40] sm:$0xff]  ;;  %v319_v54 = vld [vmem:[#allocation8 + $0x38] sm:$0xff]  ;;  %v318_v55 = vld [vmem:[#allocation8 + $0x30] sm:$0xff] }
  0x1f   :  { %336 = vperm.xlu0 %851, %v1096_v8   ;;  %455 = vrot.lane.b32.xlu1 %v1088_v5, %s1018_s26  ;;  %v117_v49 = vpack.c.bf16 %v113_v47, %v111_v46  ;;  %v317_v56 = vld [vmem:[#allocation8 + $0x28] sm:$0xff]  ;;  %v316_v57 = vld [vmem:[#allocation8 + $0x20] sm:$0xff]  ;;  %v315_v58 = vld [vmem:[#allocation8 + $0x18] sm:$0xff] }
  0x20   :  { %527 = vrot.lane.b32.xlu2 %v1088_v5, %s1019_s27  ;;  %356 = vmatpush.msra.mxu2 %v325_v37  ;;  %v314_v59 = vld [vmem:[#allocation8 + $0x10] sm:$0xff]  ;;  %v313_v60 = vld [vmem:[#allocation8 + $0x8] sm:$0xff]  ;;  %v312_v61 = vld [vmem:[#allocation8] sm:$0xff] }
  0x21   :  { %258 = vmatpush.bf16.msra.mxu0 %v821_v9 }
  0x22   :  { %277 = vmatpush.bf16.msra.mxu1 %v829_v10  ;;  %357 = vmatpush.msra.mxu2 %v324_v43 }
  0x24   :  { %358 = vmatpush.msra.mxu2 %v323_v50 }
  0x25   :  { %259 = vmatpush.bf16.msra.mxu0 %v820_v11 }
  0x26   :  { %278 = vmatpush.bf16.msra.mxu1 %v828_v12  ;;  %359 = vmatpush.msra.mxu2 %v322_v51 }
  0x27   :  { %457 = vrot.lane.b32.xlu0 %v1096_v8, %s1018_s26  ;;  %599 = vrot.lane.b32.xlu1 %v1088_v5, %s1021_s28 }
  0x28   :  { %387 = vrot.lane.b32.xlu2 %v1113_v24, %s1017_s23  ;;  %857 = vset.pattern.permute.xlu0 %v1022_v25 }
  0x29   :  { %260 = vmatpush.bf16.msra.mxu0 %v819_v14  ;;  %360 = vmatpush.msra.mxu2 %v321_v52 }
  0x2a   :  { %279 = vmatpush.bf16.msra.mxu1 %v827_v15 }
  0x2b   :  { %361 = vmatpush.msra.mxu2 %v320_v53 }
  0x2d   :  { %261 = vmatpush.bf16.msra.mxu0 %v818_v22  ;;  %362 = vmatpush.msra.mxu2 %v319_v54  ;;  %v664_v54 = vld [vmem:[#allocation9 + $0x78] sm:$0xff] }
  0x2e   :  { %280 = vmatpush.bf16.msra.mxu1 %v826_v23  ;;  %665 = vmatpush.msra.mxu3 %v664_v54 }
  0x2f   :  { %529 = vrot.lane.b32.xlu0 %v1096_v8, %s1019_s27  ;;  %459 = vrot.lane.b32.xlu1 %v1113_v24, %s1018_s26 }
  0x30   :  { %601 = vrot.lane.b32.xlu2 %v1096_v8, %s1021_s28  ;;  %363 = vmatpush.msra.mxu2 %v318_v55  ;;  %v663_v55 = vld [vmem:[#allocation9 + $0x70] sm:$0xff] }
  0x31   :  { %262 = vmatpush.bf16.msra.mxu0 %v817_v31  ;;  %666 = vmatpush.msra.mxu3 %v663_v55 }
  0x32   :  { %281 = vmatpush.bf16.msra.mxu1 %v825_v32  ;;  %364 = vmatpush.msra.mxu2 %v317_v56  ;;  %v662_v56 = vld [vmem:[#allocation9 + $0x68] sm:$0xff] }
  0x33   :  { %667 = vmatpush.msra.mxu3 %v662_v56 }
  0x34   :  { %263 = vmatmul.bf16.vlgmr.msra.gmra.mxu0 %v114_v33  ;;  %365 = vmatpush.msra.mxu2 %v316_v57 }
  0x35   :  { %282 = vmatmul.bf16.vlgmr.msra.gmra.mxu1 %v115_v34 }
  0x36   :  { %366 = vmatpush.msra.mxu2 %v315_v58 }
  0x37   :  { %389 = vrot.lane.b32.xlu0 %v1128_v38, %s1017_s23  ;;  %531 = vrot.lane.b32.xlu1 %v1113_v24, %s1019_s27 }
  0x38   :  { %461 = vrot.lane.b32.xlu2 %v1128_v38, %s1018_s26  ;;  %367 = vmatpush.msra.mxu2 %v314_v59  ;;  %v661_v59 = vld [vmem:[#allocation9 + $0x60] sm:$0xff] }
  0x39   :  { %668 = vmatpush.msra.mxu3 %v661_v59 }
  0x3a   :  { %368 = vmatpush.msra.mxu2 %v313_v60  ;;  %v659_v60 = vld [vmem:[#allocation9 + $0x50] sm:$0xff] }
  0x3c   :  { %369 = vmatpush.msra.mxu2 %v312_v61  ;;  %v658_v61 = vld [vmem:[#allocation9 + $0x48] sm:$0xff] }
  0x3f   :  { %603 = vrot.lane.b32.xlu0 %v1113_v24, %s1021_s28  ;;  %533 = vrot.lane.b32.xlu1 %v1128_v38, %s1019_s27 }
  0x40   :  { %605 = vrot.lane.b32.xlu2 %v1128_v38, %s1021_s28  ;;  %s1025_s28 = smov [#allocation11]  }
  0x41   :  { %s734_s29 = sshll.u32 %s1025_s28, 4  ;;  %s735_s29 = int_to_ptr.vmem [resolvable:$true] %s734_s29 }
  0x44   :  { %268 = vmatmul.bf16.gmra.mxu0 %v116_v48 }
  0x45   :  { %287 = vmatmul.bf16.gmra.mxu1 %v117_v49 }
  0x47   :  { %431 = vperm.xlu1 %852, %v1088_v5   ;;  %507 = vperm.xlu0 %857, %v1096_v8  }
  0x48   :  { %575 = vperm.xlu2 %855, %v1088_v5  }
  0x4f   :  { %853 = vset.pattern.permute.xlu1 %v1022_v25  ;;  %861 = vset.pattern.permute.xlu0 %v1024_v62 }
  0x50   :  { %503 = vperm.xlu1 %853, %v1088_v5   ;;  %856 = vset.pattern.permute.xlu2 %v1016_v0 }
  0x51   :  { %341 = vperm.xlu2 %856, %v1113_v24  }
  0x58   :  { %854 = vset.pattern.permute.xlu1 %v1020_v17 }
  0x59   :  { %435 = vperm.xlu1 %854, %v1096_v8   ;;  %858 = vset.pattern.permute.xlu2 %v1023_v26 }
  0x5a   :  { %579 = vperm.xlu2 %858, %v1096_v8  }
  0x61   :  { %439 = vperm.xlu1 %854, %v1113_v24  }
  0x62   :  { %859 = vset.pattern.permute.xlu2 %v1016_v0 }
  0x63   :  { %346 = vperm.xlu2 %859, %v1128_v38  }
  0x69   :  { %860 = vset.pattern.permute.xlu1 %v1022_v25 }
  0x6a   :  { %511 = vperm.xlu1 %860, %v1113_v24  }
  0x6b   :  { %862 = vset.pattern.permute.xlu2 %v1024_v62 }
  0x72   :  { %863 = vset.pattern.permute.xlu1 %v1024_v62  ;;  %v386_v63 = vpop.permute.xlu2 %385 }
  0x7a   :  { %v528_v3 = vpop.permute.xlu2 %527 }
  0x82   :  { %v388_v6 = vpop.permute.xlu2 %387 }
  0x89   :  { %v384_v1 = vpop.permute.xlu1 %383  ;;  %v1161_v2 = vpop.permute.xlu0 %331 }
  0x8a   :  { %v602_v15 = vpop.permute.xlu2 %601 }
  0x91   :  { %v456_v4 = vpop.permute.xlu1 %455  ;;  %v1163_v5 = vpop.permute.xlu0 %336 }
  0x92   :  { %v462_v45 = vpop.permute.xlu2 %461 }
  0x99   :  { %v600_v7 = vpop.permute.xlu1 %599  ;;  %v458_v14 = vpop.permute.xlu0 %457 }
  0xa1   :  { %v530_v23 = vpop.permute.xlu0 %529  ;;  %v460_v33 = vpop.permute.xlu1 %459 }
  0xa9   :  { %v390_v36 = vpop.permute.xlu0 %389  ;;  %v532_v40 = vpop.permute.xlu1 %531 }
  0xb1   :  { %v264_v8 = vpop.f32.mrf.mxu0  ;;  %v604_v41 = vpop.permute.xlu0 %603 }
  0xb2   :  { %v283_v9 = vpop.f32.mrf.mxu1 }
  0xb3   :  { %v1165_v10 = vadd.f32 %v283_v9, %v264_v8  ;;  %v653_v9 = vld [vmem:[#allocation9 + $0x20] sm:$0xff] }
  0xb5   :  { %v611_v11 = vmul.f32 %v600_v7, %v1165_v10  ;;  %370 = vmatmul.f32.vlgmr.msra.gmra.mxu2 %v1165_v10  ;;  %v467_v12 = vmul.f32 %v456_v4, %v1165_v10  ;;  %v395_v13 = vmul.f32 %v384_v1, %v1165_v10  ;;  %v539_v22 = vmul.f32 %v528_v3, %v1165_v10  ;;  %v657_v1 = vld [vmem:[#allocation9 + $0x40] sm:$0xff]  ;;  %v656_v3 = vld [vmem:[#allocation9 + $0x38] sm:$0xff]  ;;  %v655_v4 = vld [vmem:[#allocation9 + $0x30] sm:$0xff] }
  0xb6   :  { %vm694_vm1 = vcmp.gt.f32.partialorder %v1165_v10, 0.0  ;;  %v654_v7 = vld [vmem:[#allocation9 + $0x28] sm:$0xff] }
  0xb7   :  { %618 = vperm.xlu1 %863, %v611_v11   ;;  %474 = vperm.xlu2 %862, %v467_v12   ;;  %v652_v11 = vld [vmem:[#allocation9 + $0x18] sm:$0xff]  ;;  %v651_v12 = vld [vmem:[#allocation9 + $0x10] sm:$0xff] }
  0xb8   :  { %402 = vperm.xlu0 %861, %v395_v13   ;;  %v650_v13 = vld [vmem:[#allocation9 + $0x8] sm:$0xff] }
  0xb9   :  { %v266_v16 = vpop.f32.mrf.mxu0 }
  0xba   :  { %v285_v18 = vpop.f32.mrf.mxu1 }
  0xbb   :  { %v286_v19 = vadd.f32 %v285_v18, %v266_v16 }
  0xbd   :  { %v612_v20 = vmul.f32 %v602_v15, %v286_v19  ;;  %373 = vmatmul.f32.gmra.mxu2 %v286_v19  ;;  %v396_v21 = vmul.f32 %v386_v63, %v286_v19  ;;  %v540_v30 = vmul.f32 %v530_v23, %v286_v19  ;;  %v468_v32 = vmul.f32 %v458_v14, %v286_v19  ;;  %v649_v15 = vld [vmem:[#allocation9] sm:$0xff]  ;;  %v1210_v23 = vld [vmem:[%s1295_s5 + $0x1] ss:$0 sm:$0xff] }
  0xbe   :  { %vm695_vm0 = vcmp.gt.f32.partialorder %v286_v19, 0.0 }
  0xbf   :  { %623 = vperm.xlu1 %863, %v612_v20   ;;  %407 = vperm.xlu2 %862, %v396_v21   ;;  %v703_v49 = vsel %vm695_vm0, 1, %v1016_v0  ;;  %v872_v20 = vld [vmem:[%s1295_s5] ss:$0 sm:$0xff] }
  0xc0   :  { %546 = vperm.xlu0 %861, %v539_v22   ;;  %v350_v22 = vmul.f32 %v872_v20, %v1161_v2 }
  0xc1   :  { %v269_v27 = vpop.f32.mrf.mxu0 }
  0xc2   :  { %v288_v28 = vpop.f32.mrf.mxu1 }
  0xc3   :  { %v289_v29 = vadd.f32 %v288_v28, %v269_v27  ;;  %v877_v27 = vld [vmem:[%s1295_s5 + $0x4] ss:$0 sm:$0xff] }
  0xc5   :  { %376 = vmatmul.f32.gmra.mxu2 %v289_v29  ;;  %v397_v31 = vmul.f32 %v388_v6, %v289_v29  ;;  %v469_v39 = vmul.f32 %v460_v33, %v289_v29  ;;  %v541_v42 = vmul.f32 %v532_v40, %v289_v29  ;;  %v613_v44 = vmul.f32 %v604_v41, %v289_v29  ;;  %v508_v6 = vpop.permute.xlu0 %507  ;;  %v1231_v40 = vld [vmem:[%s1295_s5 + $0x3] ss:$0 sm:$0xff] }
  0xc6   :  { %vm696_vm2 = vcmp.gt.f32.partialorder %v289_v29, 0.0 }
  0xc7   :  { %551 = vperm.xlu2 %862, %v540_v30   ;;  %412 = vperm.xlu1 %863, %v397_v31   ;;  %v1218_v30 = vld [vmem:[%s1295_s5 + $0x5] ss:$0 sm:$0xff] }
  0xc8   :  { %479 = vperm.xlu0 %861, %v468_v32  }
  0xc9   :  { %v271_v34 = vpop.f32.mrf.mxu0 }
  0xca   :  { %v290_v35 = vpop.f32.mrf.mxu1 }
  0xcb   :  { %v291_v37 = vadd.f32 %v290_v35, %v271_v34  ;;  %v1224_v34 = vld [vmem:[%s1295_s5 + $0x2] ss:$0 sm:$0xff] }
  0xcd   :  { %379 = vmatmul.f32.gmra.mxu2 %v291_v37  ;;  %v398_v43 = vmul.f32 %v390_v36, %v291_v37  ;;  %v470_v46 = vmul.f32 %v462_v45, %v291_v37  ;;  %vm697_vm3 = vcmp.gt.f32.partialorder %v291_v37, 0.0 }
  0xcf   :  { %865 = vset.pattern.permute.xlu2 %v1023_v26  ;;  %864 = vset.pattern.permute.xlu1 %v1020_v17  ;;  %v534_v17 = vpop.permute.xlu1 %533 }
  0xd0   :  { %484 = vperm.xlu0 %861, %v469_v39   ;;  %583 = vperm.xlu2 %865, %v1113_v24   ;;  %v606_v24 = vpop.permute.xlu2 %605  ;;  %v542_v47 = vmul.f32 %v534_v17, %v291_v37  ;;  %v351_v39 = vmul.f32 %v872_v20, %v1163_v5  ;;  %v1242_v5 = vld [vmem:[%s1295_s5 + $0x7] ss:$0 sm:$0xff] }
  0xd1   :  { %443 = vperm.xlu1 %864, %v1128_v38   ;;  %v614_v48 = vmul.f32 %v606_v24, %v291_v37 }
  0xd7   :  { %v432_v51 = vpop.permute.xlu1 %431 }
  0xd8   :  { %556 = vperm.xlu0 %861, %v541_v42   ;;  %867 = vset.pattern.permute.xlu2 %v1024_v62  ;;  %v1189_v50 = vpop.permute.xlu2 %575  ;;  %v447_v2 = vmul.f32 %v1210_v23, %v432_v51  ;;  %v1237_v42 = vld [vmem:[%s1295_s5 + $0x6] ss:$0 sm:$0xff] }
  0xd9   :  { %866 = vset.pattern.permute.xlu1 %v1024_v62  ;;  %417 = vperm.xlu2 %867, %v398_v43  }
  0xda   :  { %628 = vperm.xlu1 %866, %v613_v44  }
  0xdf   :  { %v504_v53 = vpop.permute.xlu1 %503 }
  0xe0   :  { %489 = vperm.xlu0 %861, %v470_v46   ;;  %v1191_v52 = vpop.permute.xlu2 %341  ;;  %v519_v41 = vmul.f32 %v1224_v34, %v504_v53 }
  0xe1   :  { %868 = vset.pattern.permute.xlu2 %v1022_v25  ;;  %v702_v25 = vsel %vm694_vm1, 1, %v1016_v0  ;;  %v352_v59 = vmul.f32 %v872_v20, %v1191_v52 }
  0xe2   :  { %869 = vset.pattern.permute.xlu1 %v1023_v26  ;;  %515 = vperm.xlu2 %868, %v1128_v38   ;;  %v704_v26 = vsel %vm696_vm2, 1, %v1016_v0 }
  0xe3   :  { %587 = vperm.xlu1 %869, %v1128_v38   ;;  %v705_v38 = vsel %vm697_vm3, 1, %v1016_v0  ;;  %v660_v0 = vld [vmem:[#allocation9 + $0x58] sm:$0xff] }
  0xe4   :  { %669 = vmatpush.msra.mxu3 %v660_v0  ;;  %v520_v0 = vmul.f32 %v1224_v34, %v508_v6 }
  0xe6   :  { %670 = vmatpush.msra.mxu3 %v659_v60 }
  0xe7   :  { %v1195_v58 = vpop.permute.xlu1 %435 }
  0xe8   :  { %561 = vperm.xlu0 %861, %v542_v47   ;;  %v1193_v57 = vpop.permute.xlu2 %579  ;;  %671 = vmatpush.msra.mxu3 %v658_v61 }
  0xea   :  { %870 = vset.pattern.permute.xlu2 %v1024_v62  ;;  %672 = vmatpush.msra.mxu3 %v657_v1 }
  0xeb   :  { %871 = vset.pattern.permute.xlu1 %v1024_v62  ;;  %633 = vperm.xlu2 %870, %v614_v48  }
  0xec   :  { %710 = vperm.xlu1 %871, %v703_v49   ;;  %673 = vmatpush.msra.mxu3 %v656_v3 }
  0xee   :  { %674 = vmatpush.msra.mxu3 %v655_v4 }
  0xef   :  { %v1199_v63 = vpop.permute.xlu1 %439 }
  0xf0   :  { %707 = vperm.xlu0 %861, %v702_v25   ;;  %v1197_v62 = vpop.permute.xlu2 %346  ;;  %675 = vmatpush.msra.mxu3 %v654_v7  ;;  %v591_v25 = vmul.f32 %v1231_v40, %v1189_v50  ;;  %v449_v52 = vmul.f32 %v1210_v23, %v1199_v63 }
  0xf2   :  { %676 = vmatpush.msra.mxu3 %v653_v9 }
  0xf3   :  { %713 = vperm.xlu2 %870, %v704_v26   ;;  %v448_v26 = vmul.f32 %v1210_v23, %v1195_v58 }
  0xf4   :  { %677 = vmatpush.msra.mxu3 %v652_v11 }
  0xf6   :  { %678 = vmatpush.msra.mxu3 %v651_v12  ;;  %v592_v12 = vmul.f32 %v1231_v40, %v1193_v57 }
  0xf7   :  { %v1201_v8 = vpop.permute.xlu1 %511 }
  0xf8   :  { %716 = vperm.xlu0 %861, %v705_v38   ;;  %679 = vmatpush.msra.mxu3 %v650_v13 }
  0xfa   :  { %680 = vmatpush.msra.mxu3 %v649_v15 }
 0x111   :  { %v475_v10 = vpop.permute.xlu2 %474 }
 0x112   :  { %v493_v36 = vmul.f32 %v1218_v30, %v475_v10 }
 0x119   :  { %v408_v18 = vpop.permute.xlu2 %407 }
 0x11a   :  { %v422_v17 = vmul.f32 %v877_v27, %v408_v18 }
 0x121   :  { %v552_v28 = vpop.permute.xlu2 %551 }
 0x122   :  { %v566_v1 = vmul.f32 %v1237_v42, %v552_v28 }
 0x129   :  { %v619_v16 = vpop.permute.xlu1 %618 }
 0x12a   :  { %v403_v14 = vpop.permute.xlu0 %402  ;;  %v584_v43 = vpop.permute.xlu2 %583  ;;  %v637_v53 = vmul.f32 %v1242_v5, %v619_v16 }
 0x12b   :  { %v421_v31 = vmul.f32 %v877_v27, %v403_v14 }
 0x131   :  { %v624_v21 = vpop.permute.xlu1 %623 }
 0x132   :  { %v547_v19 = vpop.permute.xlu0 %546  ;;  %v638_v14 = vmul.f32 %v1242_v5, %v624_v21 }
 0x133   :  { %v565_v24 = vmul.f32 %v1237_v42, %v547_v19  ;;  %v418_v4 = vpop.permute.xlu2 %417  ;;  %v353_v19 = vmul.f32 %v872_v20, %v1197_v62 }
 0x134   :  { %v424_v57 = vmul.f32 %v877_v27, %v418_v4 }
 0x138   :  { %v371_v29 = vpop.f32.mrf.mxu2 }
 0x139   :  { %v372_v32 = vadd.f32 %v371_v29, %v350_v22  ;;  %v413_v45 = vpop.permute.xlu1 %412  ;;  %v521_v22 = vmul.f32 %v1224_v34, %v1201_v8 }
 0x13a   :  { %v480_v33 = vpop.permute.xlu0 %479  ;;  %v423_v58 = vmul.f32 %v877_v27, %v413_v45 }
 0x13b   :  { %v425_v35 = vadd.f32 %v421_v31, %v372_v32  ;;  %v494_v54 = vmul.f32 %v1218_v30, %v480_v33 }
 0x13c   :  { %v516_v32 = vpop.permute.xlu2 %515 }
 0x13d   :  { %v451_v37 = vadd.f32 %v447_v2, %v425_v35  ;;  %v522_v45 = vmul.f32 %v1224_v34, %v516_v32 }
 0x13f   :  { %v497_v44 = vadd.f32 %v493_v36, %v451_v37  ;;  %v593_v37 = vmul.f32 %v1231_v40, %v584_v43 }
 0x140   :  { %v374_v46 = vpop.f32.mrf.mxu2 }
 0x141   :  { %v375_v47 = vadd.f32 %v374_v46, %v351_v39  ;;  %v523_v48 = vadd.f32 %v519_v41, %v497_v44 }
 0x142   :  { %v485_v49 = vpop.permute.xlu0 %484 }
 0x143   :  { %v426_v38 = vadd.f32 %v422_v17, %v375_v47  ;;  %v569_v51 = vadd.f32 %v565_v24, %v523_v48  ;;  %v444_v50 = vpop.permute.xlu1 %443  ;;  %v495_v15 = vmul.f32 %v1218_v30, %v485_v49 }
 0x144   :  { %v450_v39 = vmul.f32 %v1210_v23, %v444_v50 }
 0x145   :  { %v452_v55 = vadd.f32 %v448_v26, %v426_v38  ;;  %v595_v56 = vadd.f32 %v591_v25, %v569_v51  ;;  %v634_v25 = vpop.permute.xlu2 %633 }
 0x146   :  { %v640_v38 = vmul.f32 %v1242_v5, %v634_v25 }
 0x147   :  { %v498_v60 = vadd.f32 %v494_v54, %v452_v55  ;;  %v641_v61 = vadd.f32 %v637_v53, %v595_v56  ;;  %v698_v54 = vld [vmem:[%s1293_s3] sm:$0xff] }
 0x148   :  { %v377_v3 = vpop.f32.mrf.mxu2 }
 0x149   :  { %v378_v7 = vadd.f32 %v377_v3, %v352_v59  ;;  %v645_v9 = vmax.f32 %v641_v61, 0.0  ;;  %v524_v10 = vadd.f32 %v520_v0, %v498_v60  ;;  %v700_v60 = vld [vmem:[%s1293_s3 + $0x10] sm:$0xff]  ;;  %v701_v3 = vld [vmem:[%s1293_s3 + $0x18] sm:$0xff] }
 0x14a   :  { %v557_v11 = vpop.permute.xlu0 %556 }
 0x14b   :  { %v427_v13 = vadd.f32 %v423_v58, %v378_v7  ;;  %681 = vmatmul.f32.vlgmr.msra.gmra.mxu3 %v645_v9  ;;  %v570_v6 = vadd.f32 %v566_v1, %v524_v10  ;;  %v567_v33 = vmul.f32 %v1237_v42, %v557_v11 }
 0x14c   :  { %v629_v21 = vpop.permute.xlu1 %628 }
 0x14d   :  { %v453_v16 = vadd.f32 %v449_v52, %v427_v13  ;;  %v596_v18 = vadd.f32 %v592_v12, %v570_v6  ;;  %v639_v8 = vmul.f32 %v1242_v5, %v629_v21  ;;  %v714_v0 = vpop.permute.xlu2 %713 }
 0x14e   :  { %vm720_vm6 = vcmp.eq.s32.totalorder %v714_v0, 1 }
 0x14f   :  { %v499_v28 = vadd.f32 %v495_v15, %v453_v16  ;;  %v642_v29 = vadd.f32 %v638_v14, %v596_v18 }
 0x150   :  { %v380_v31 = vpop.f32.mrf.mxu2 }
 0x151   :  { %v525_v63 = vadd.f32 %v521_v22, %v499_v28  ;;  %v381_v2 = vadd.f32 %v380_v31, %v353_v19  ;;  %v646_v35 = vmax.f32 %v642_v29, 0.0 }
 0x152   :  { %v490_v36 = vpop.permute.xlu0 %489 }
 0x153   :  { %v571_v62 = vadd.f32 %v567_v33, %v525_v63  ;;  %v428_v20 = vadd.f32 %v424_v57, %v381_v2  ;;  %684 = vmatmul.f32.gmra.mxu3 %v646_v35  ;;  %v496_v27 = vmul.f32 %v1218_v30, %v490_v36 }
 0x155   :  { %v454_v41 = vadd.f32 %v450_v39, %v428_v20  ;;  %v597_v44 = vadd.f32 %v593_v37, %v571_v62  ;;  %v588_v48 = vpop.permute.xlu1 %587 }
 0x156   :  { %v594_v43 = vmul.f32 %v1231_v40, %v588_v48 }
 0x157   :  { %v500_v46 = vadd.f32 %v496_v27, %v454_v41  ;;  %v643_v17 = vadd.f32 %v639_v8, %v597_v44 }
 0x159   :  { %v526_v24 = vadd.f32 %v522_v45, %v500_v46  ;;  %v647_v47 = vmax.f32 %v643_v17, 0.0 }
 0x15a   :  { %v562_v49 = vpop.permute.xlu0 %561 }
 0x15b   :  { %v568_v23 = vmul.f32 %v1237_v42, %v562_v49  ;;  %687 = vmatmul.f32.gmra.mxu3 %v647_v47  ;;  %v699_v42 = vld [vmem:[%s1293_s3 + $0x8] sm:$0xff] }
 0x15d   :  { %v572_v26 = vadd.f32 %v568_v23, %v526_v24 }
 0x15e   :  { %v711_v40 = vpop.permute.xlu1 %710 }
 0x15f   :  { %v598_v51 = vadd.f32 %v594_v43, %v572_v26  ;;  %vm719_vm5 = vcmp.eq.s32.totalorder %v711_v40, 1 }
 0x161   :  { %v644_v30 = vadd.f32 %v640_v38, %v598_v51 }
 0x162   :  { %v708_v34 = vpop.permute.xlu0 %707 }
 0x163   :  { %v648_v53 = vmax.f32 %v644_v30, 0.0  ;;  %vm718_vm4 = vcmp.eq.s32.totalorder %v708_v34, 1 }
 0x165   :  { %690 = vmatmul.f32.gmra.mxu3 %v648_v53 }
 0x16a   :  { %v717_v50 = vpop.permute.xlu0 %716 }
 0x16b   :  { %vm721_vm7 = vcmp.eq.s32.totalorder %v717_v50, 1 }
 0x1ce   :  { %v682_v55 = vpop.f32.mrf.mxu3 }
 0x1cf   :  { %v722_v56 = vsel %vm718_vm4, %v682_v55, %v698_v54 }
 0x1d0   :  { %726 = vst [vmem:[#allocation11] sm:$0xff] %v722_v56 }
 0x1d6   :  { %v685_v5 = vpop.f32.mrf.mxu3 }
 0x1d7   :  { %v723_v59 = vsel %vm719_vm5, %v685_v5, %v699_v42 }
 0x1d8   :  { %727 = vst [vmem:[#allocation11 + $0x8] sm:$0xff] %v723_v59 }
 0x1de   :  { %v688_v61 = vpop.f32.mrf.mxu3 }
 0x1df   :  { %v724_v1 = vsel %vm720_vm6, %v688_v61, %v700_v60 }
 0x1e0   :  { %728 = vst [vmem:[#allocation11 + $0x10] sm:$0xff] %v724_v1 }
 0x1e8   :  { %v691_v4 = vpop.f32.mrf.mxu3 }
 0x1e9   :  { %v725_v58 = vsel %vm721_vm7, %v691_v4, %v701_v3 }
 0x1ea   :  { %729 = vst [vmem:[#allocation11 + $0x18] sm:$0xff] %v725_v58 }
 0x1eb   :  { %742 = dma.vmem_to_hbm [thread:$0]  %s735_s29, 512, %s737_s9, [#allocation5], %s1013_s19, %s1013_s19, %s1014_s20  }
 0x1ec   :  { %1006 = dma.done.wait [#allocation5], 512  }
 0x1ed   :  { %1007 = vsyncadd [#allocation5], 4294966784 }
 0x1ee   :  { %747 = vsyncpa [#allocation4], 1 }
 0x1ef   :  { %748 = vsyncpa [#allocation7], 1 }
 0x1f0   :  { %749 = vsyncpa [#allocation10], 1 }
 0x1f1   :  { %750 = vsyncpa [#allocation5], 1 }

</bundles_post_ra>
